<compile_context>
chip_gen: v7x
topology: tpu7x:2x2x1
jax: 0.10.0
libtpu: 0.0.40
codegen_flags: <defaults>
</compile_context>

<pallas_src>
import functools

import jax
import jax.numpy as jnp
from jax import lax
from jax.experimental import pallas as pl
from jax.experimental.pallas import tpu as pltpu


def _round_up(x: int, m: int) -> int:
    return (x + m - 1) // m * m


def _sublane_multiple(dtype) -> int:
    # Minimum second-minor tile multiple per dtype width.
    return {4: 8, 2: 16, 1: 32}.get(jnp.dtype(dtype).itemsize, 8)


def _vmem_limit_bytes() -> int:
    # Physical VMEM per core minus headroom for compiler scratch/semaphores.
    # v7x: 64 MiB -> ~48 MiB usable; v5e/v6e: 128 MiB -> ~112 MiB usable.
    try:
        cap = int(pltpu.get_tpu_info().vmem_capacity_bytes)
    except Exception:
        cap = 64 << 20  # conservative fallback (safe on every generation)
    return max(32 << 20, cap - (16 << 20))


def _matmul_kernel(x_ref, w_ref, o_ref):
    # x_ref: (tm, K), w_ref: (K, tn) -> o_ref: (tm, tn), f32 MXU accumulation.
    o_ref[...] = jnp.dot(
        x_ref[...], w_ref[...], preferred_element_type=jnp.float32
    ).astype(o_ref.dtype)


@functools.partial(jax.jit, static_argnames=("tm",))
def mask_skill_forward(x, weight, *, tm=None):
    """y = x @ weight.T  (nn.Linear(hidden, skill_sum, bias=False)).

    x:      (..., hidden)
    weight: (skill_sum, hidden)
    returns (..., skill_sum)
    """
    *lead, hidden = x.shape
    skill_sum, hidden_w = weight.shape
    assert hidden == hidden_w, "hidden dim mismatch"

    m = 1
    for d in lead:
        m *= d
    m = max(int(m), 1)
    x2d = x.reshape(m, hidden)

    out_dtype = x.dtype
    x_item = jnp.dtype(x.dtype).itemsize
    w_item = jnp.dtype(weight.dtype).itemsize
    o_item = jnp.dtype(out_dtype).itemsize

    # ---- lane-dense output: pad N (skill_sum) of the *small* weight only ---
    n_padded = _round_up(max(skill_sum, 1), 128)
    w_t = weight.T  # (hidden, skill_sum); one-time O(weight) transpose.
    if n_padded != skill_sum:
        w_t = jnp.pad(w_t, ((0, 0), (0, n_padded - skill_sum)))

    sublane = _sublane_multiple(x.dtype)
    vmem_limit = _vmem_limit_bytes()
    reserve = 4 << 20

    # Ensure >= 2 row tiles when possible so both v7x TensorCores get work.
    half_m = _round_up(max(pl.cdiv(m, 2), 1), sublane)
    tm_cap = 2048 if tm is None else max(sublane, _round_up(int(tm), sublane))

    flops = 2 * m * n_padded * hidden
    bytes_accessed = (
        m * hidden * x_item + hidden * n_padded * w_item + m * n_padded * o_item
    )
    cost = pl.CostEstimate(
        flops=flops, transcendentals=0, bytes_accessed=bytes_accessed
    )

    w_bytes = hidden * n_padded * w_item  # single VMEM-resident copy
    per_row_full_n = 2 * hidden * x_item + 2 * n_padded * o_item
    resident_ok = (w_bytes + sublane * per_row_full_n + reserve) <= vmem_limit

    if resident_ok:
        # ---- Path 1: whole (transposed, padded) weight resident in VMEM ----
        tm_budget = (vmem_limit - reserve - w_bytes) // per_row_full_n
        tm_budget = max(sublane, (tm_budget // sublane) * sublane)
        tm_eff = max(sublane, min(tm_cap, tm_budget, half_m))
        grid = (pl.cdiv(m, tm_eff),)

        out = pl.pallas_call(
            _matmul_kernel,
            out_shape=jax.ShapeDtypeStruct((m, n_padded), out_dtype),
            grid=grid,
            in_specs=[
                # Activations: a fresh (tm, hidden) tile per grid step.
                pl.BlockSpec((tm_eff, hidden), lambda i: (i, 0)),
                # Weight: whole array, single VMEM copy, no pipelining.
                pl.BlockSpec(memory_space=pltpu.MemorySpace.VMEM),
            ],
            out_specs=pl.BlockSpec((tm_eff, n_padded), lambda i: (i, 0)),
            compiler_params=pltpu.CompilerParams(
                dimension_semantics=("parallel",),
                vmem_limit_bytes=vmem_limit,
            ),
            cost_estimate=cost,
        )(x2d, w_t)
    else:
        # ---- Path 2: large skill_sum -> N-tiled weight, 2-D grid ----------
        def _tm_for(tn_):
            per_row = 2 * hidden * x_item + 2 * tn_ * o_item
            avail = vmem_limit - reserve - 2 * hidden * tn_ * w_item
            if avail <= 0:
                return 0
            return (avail // per_row // sublane) * sublane

        tn = min(n_padded, 512)
        while tn > 128 and _tm_for(tn) < sublane:
            tn = max(128, _round_up(tn // 2, 128))
        tm_budget = max(sublane, _tm_for(tn))
        # TODO(synk): add K (hidden) tiling with a VMEM f32 accumulator if the
        # minimal (sublane, hidden) tile still does not fit VMEM.
        tm_eff = max(sublane, min(tm_cap, tm_budget, half_m))

        # M innermost so each weight tile is reused across all row tiles.
        grid = (pl.cdiv(n_padded, tn), pl.cdiv(m, tm_eff))

        out = pl.pallas_call(
            _matmul_kernel,
            out_shape=jax.ShapeDtypeStruct((m, n_padded), out_dtype),
            grid=grid,
            in_specs=[
                pl.BlockSpec((tm_eff, hidden), lambda j, i: (i, 0)),
                pl.BlockSpec((hidden, tn), lambda j, i: (0, j)),
            ],
            out_specs=pl.BlockSpec((tm_eff, tn), lambda j, i: (i, j)),
            compiler_params=pltpu.CompilerParams(
                dimension_semantics=("parallel", "parallel"),
                vmem_limit_bytes=vmem_limit,
            ),
            cost_estimate=cost,
        )(x2d, w_t)

    if n_padded != skill_sum:
        out = out[:, :skill_sum]
    return out.reshape(*lead, skill_sum)


if __name__ == "__main__":
    # Small shapes consistent with the module's forward: (batch, seq, hidden).
    batch, seq, hidden, skill_sum = 2, 8, 32, 16

    key = jax.random.PRNGKey(0)
    kx, kw = jax.random.split(key)
    x = jax.random.normal(kx, (batch, seq, hidden), dtype=jnp.float32)
    # Deterministic synthetic parameters matching nn.Linear's (out, in) shape.
    weight = jax.random.normal(kw, (skill_sum, hidden), dtype=jnp.float32) * 0.02

    y = mask_skill_forward(x, weight)
    y = jax.block_until_ready(y)

    # Reference check against plain JAX (x @ W^T) at highest precision.
    y_ref = jnp.einsum("bsh,nh->bsn", x, weight, precision=lax.Precision.HIGHEST)
    assert y.shape == (batch, seq, skill_sum)
    assert jnp.allclose(y, y_ref, atol=1e-4, rtol=1e-4), float(
        jnp.max(jnp.abs(y - y_ref))
    )

    print("KERNEL_OK")
</pallas_src>

<mosaic_0001>
module attributes {stable_mosaic.version = 11 : i64} {
  func.func @_matmul_kernel(%arg0: i32, %arg1: memref<8x32xf32, #tpu.memory_space<vmem>>, %arg2: memref<32x128xf32, #tpu.memory_space<vmem>>, %arg3: memref<8x128xf32, #tpu.memory_space<vmem>>) attributes {dimension_semantics = [#tpu.dimension_semantics<parallel>], iteration_bounds = array<i64: 2>, scalar_prefetch = 0 : i64, scratch_operands = 0 : i64, tpu.core_type = #tpu.core_type<tc>, window_params = [{transform_indices = @transform_0, window_bounds = array<i64: 8, 32>}, {pipeline_mode = #tpu.pipeline_mode<synchronous>, transform_indices = @transform_1, window_bounds = array<i64: 32, 128>}, {transform_indices = @transform_2, window_bounds = array<i64: 8, 128>}]} {
    %c0 = arith.constant 0 : index
    %c0_0 = arith.constant 0 : index
    %0 = vector.load %arg1[%c0, %c0_0] : memref<8x32xf32, #tpu.memory_space<vmem>>, vector<8x32xf32>
    %c0_1 = arith.constant 0 : index
    %c0_2 = arith.constant 0 : index
    %1 = vector.load %arg2[%c0_1, %c0_2] : memref<32x128xf32, #tpu.memory_space<vmem>>, vector<32x128xf32>
    %cst = arith.constant dense<0.000000e+00> : vector<8x128xf32>
    %2 = tpu.matmul %0, %1, %cst {dimension_numbers = #tpu.dot_dimension_numbers<[1], [0], [0], [1], [0, 0, 1, 1], [], []>} : vector<8x32xf32>, vector<32x128xf32>, vector<8x128xf32> -> vector<8x128xf32>
    %c0_3 = arith.constant 0 : index
    %c0_4 = arith.constant 0 : index
    %3 = vector.load %arg3[%c0_3, %c0_4] : memref<8x128xf32, #tpu.memory_space<vmem>>, vector<8x128xf32>
    tpu.vector_store %arg3[%c0_3, %c0_4], %2 {strides = array<i32>} : memref<8x128xf32, #tpu.memory_space<vmem>>, vector<8x128xf32>,
    return
  }
  func.func @transform_0(%arg0: i32) -> (i32, i32) {
    %c0_i32 = arith.constant 0 : i32
    %c0_i32_0 = arith.constant 0 : i32
    return %arg0, %c0_i32 : i32, i32
  }
  func.func @transform_1(%arg0: i32) -> (i32, i32) {
    %c0_i32 = arith.constant 0 : i32
    %c0_i32_0 = arith.constant 0 : i32
    %c0_i32_1 = arith.constant 0 : i32
    return %c0_i32, %c0_i32_0 : i32, i32
  }
  func.func @transform_2(%arg0: i32) -> (i32, i32) {
    %c0_i32 = arith.constant 0 : i32
    %c0_i32_0 = arith.constant 0 : i32
    return %arg0, %c0_i32 : i32, i32
  }
}

</mosaic_0001>

<bundles_post_ra>
// kernel: mask_skill_forward.1
= control target key start
LH: loop header
LB: loop body
LE: loop exit
PB: predicated region body
PF: predicated region fallthrough
CT: control target
= control target key end

     0   :  { %s341_s9 = smov 0   ;;  %s370_s0 = inlined_call_operand.vmem [shape: f32[16,32], index: 0, kind: input, shape index: {}]   ;;  %s371_s1 = inlined_call_operand.vmem [shape: f32[32,128], index: 1, kind: input, shape index: {}]   ;;  %s372_s2 = inlined_call_operand.vmem [shape: f32[16,128], index: 2, kind: output, shape index: {}]  }
   0x1 LB: > { %s272_s10 = sadd.s32 4294967295, %s321_s9   ;;  %p276_p0 = scmp.ge.s32.totalorder %s321_s9, 1  ;;  %s321_s9 = sphi %s341_s9, %s12_s9  }
   0x2   : > { %p111_p1 = scmp.lt.s32.totalorder %s321_s9, 3 }
   0x4   : > { %p112_p2 = pnand %p276_p0, %p111_p1 }
   0x5   : > { %v140_v0 = vld [vmem:[%s371_s1] sm:$0xff] (!%p112_p2)  ;;  %v141_v1 = vld [vmem:[%s371_s1 + $0x8] sm:$0xff] (!%p112_p2)  ;;  %v142_v2 = vld [vmem:[%s371_s1 + $0x10] sm:$0xff] (!%p112_p2)  ;;  %v323_v3 = vmov (!%p112_p2), 0.0|0.0   ;;  %vm324_vm0 = vmmov (!%p112_p2), 0   ;;  %v325_v6 = vmov (!%p112_p2), 0.0  }
   0x6   : > { %115 = sbr.rel (%p112_p2) target bundleno = 230 (0xe6), region = 28  ;;  %298 = vmatprep.subr.bf16.mxu0 (!%p112_p2), %v323_v3  ;;  %v299_v4 = vpack.c.bf16 (!%p112_p2), %v141_v1, %v140_v0  ;;  %v143_v5 = vld [vmem:[%s371_s1 + $0x18] sm:$0xff] (!%p112_p2)  ;;  %295 = vmatprep.mubr.msk.f32.mxu0 (!%p112_p2), %vm324_vm0, %v325_v6  ;;  %p131_p3 = scmp.lt.s32.totalorder (!%p112_p2), %s272_s10, 1  ;;  %vm144_vm1 = vcmask (!%p112_p2), 261120  }
   0x7   : > { %v302_v7 = vpack.c.bf16 (!%p112_p2), %v143_v5, %v142_v2 }
   0x8   : > { %300 = vmatpush3.bf16.msra.mxu0 (!%p112_p2), %v299_v4 }
   0x9   : > { %301 = vmatprep.subr.bf16.mxu0 (!%p112_p2), %v323_v3 }
   0xc   : > { %303 = vmatpush3.bf16.msra.mxu0 (!%p112_p2), %v302_v7 }
   0xd   : > { %s374_s10 = smov (!%p131_p3, %s272_s10), 1 }
   0xe   : > { %s277_s19 = sshll.u32 %s374_s10, 3 }
   0xf   : > { %s134_s22 = scalar_lea.vmem %s370_s0, %s277_s19  ;;  %s138_s25 = scalar_lea.vmem %s372_s2, %s277_s19 }
  0x10   : > { %v139_v8 = vld [vmem:[%s134_s22] sm:$0xff] }
  0x11   : > { %296 = vmatmul.mubr.msk.f32.vlgmr.msra.gmra.mrb[0].mxu0 %vm144_vm1, %v139_v8 }
  0xe4   : > { %v214_v9 = vpop.f32.mrb[0].mxu0 }
  0xe5   : > { %218 = vst [vmem:[%s138_s25] sm:$0xff] %v214_v9  ;;  %v297_v10 = vpop.f32.mrb[1].mxu0 }
  0xe6 PF: > { %s12_s9 = sadd.s32 1, %s321_s9  }
  0xe7   : > { %p9_p4 = scmp.ge.s32.totalorder %s12_s9, 4  }
  0xe9   :  { %11 = sbr.rel (!%p9_p4) target bundleno = 1 (0x1), region = 58 }

</bundles_post_ra>
